<compile_context>
chip_gen: v7x
topology: tpu7x:2x2x1
jax: 0.10.0
libtpu: 0.0.40
codegen_flags: <defaults>
</compile_context>

<pallas_src>
import jax
import jax.numpy as jnp
from jax.experimental import pallas as pl
from jax.experimental.pallas import tpu as pltpu


def _round_up(n, m):
    return ((n + m - 1) // m) * m


def vae_kernel(x_ref, eps_ref,
               w1_ref, b1_ref,          # encoder_input:   (input_dim, hidden_dim)
               wmu_ref, bmu_ref,        # fc_mu half:      (hidden_dim, latent_dim)
               wlv_ref, blv_ref,        # fc_logvar half:  (hidden_dim, latent_dim)
               wd1_ref, bd1_ref,        # decoder_input:   (latent_dim, hidden_dim)
               wd2_ref, bd2_ref,        # decoder_output:  (hidden_dim, input_dim)
               xhat_ref, mu_ref, logvar_ref):
    x = x_ref[...]

    # ----- encoder: Linear -> Tanh -> Linear (split into two lane-dense dots) -----
    h = jnp.tanh(jnp.dot(x, w1_ref[...], preferred_element_type=jnp.float32)
                 + b1_ref[...])
    mu = jnp.dot(h, wmu_ref[...], preferred_element_type=jnp.float32) + bmu_ref[...]
    logvar = jnp.dot(h, wlv_ref[...], preferred_element_type=jnp.float32) + blv_ref[...]

    # ----- reparameterize: z = mu + eps * exp(0.5 * logvar) -----
    z = mu + eps_ref[...] * jnp.exp(0.5 * logvar)

    # ----- decoder: Linear -> Tanh -> Linear -> Tanh -----
    hd = jnp.tanh(jnp.dot(z, wd1_ref[...], preferred_element_type=jnp.float32)
                  + bd1_ref[...])
    x_hat = jnp.tanh(jnp.dot(hd, wd2_ref[...], preferred_element_type=jnp.float32)
                     + bd2_ref[...])

    xhat_ref[...] = x_hat
    mu_ref[...] = mu
    logvar_ref[...] = logvar


def vae_forward(x, eps, params, *, tile_b=256):
    """Run the fused VAE forward pass. Returns (x_hat, mu, logvar)."""
    B, input_dim = x.shape
    latent_dim = eps.shape[1]
    w1, b1, w2, b2, wd1, bd1, wd2, bd2 = params
    hidden_dim = w1.shape[1]

    # Split fc_mu_logvar into mu / logvar halves (chunk(2, dim=1) semantics):
    # first latent_dim output columns -> mu, remaining -> logvar.
    w_mu, w_lv = w2[:, :latent_dim], w2[:, latent_dim:]
    b_mu, b_lv = b2[:, :latent_dim], b2[:, latent_dim:]

    # Batch tile: multiple of 8 sublanes; cap at tile_b. Pad B up so the grid divides.
    tb = min(tile_b, _round_up(B, 8))
    Bp = _round_up(B, tb)
    if Bp != B:
        pad = Bp - B
        x = jnp.pad(x, ((0, pad), (0, 0)))
        eps = jnp.pad(eps, ((0, pad), (0, 0)))
    grid = (Bp // tb,)

    # Activation tiles march with the grid; weights/biases stay resident.
    def act_spec(d):
        return pl.BlockSpec((tb, d), lambda i: (i, 0))

    def resident_spec(arr):
        return pl.BlockSpec(arr.shape, lambda i: (0, 0))

    kernel_params = (w1, b1, w_mu, b_mu, w_lv, b_lv, wd1, bd1, wd2, bd2)

    in_specs = [act_spec(input_dim), act_spec(latent_dim)] + \
               [resident_spec(p) for p in kernel_params]
    out_specs = (act_spec(input_dim), act_spec(latent_dim), act_spec(latent_dim))
    out_shape = (
        jax.ShapeDtypeStruct((Bp, input_dim), jnp.float32),   # x_hat
        jax.ShapeDtypeStruct((Bp, latent_dim), jnp.float32),  # mu
        jax.ShapeDtypeStruct((Bp, latent_dim), jnp.float32),  # logvar
    )

    # Advisory cost estimate for XLA's scheduler.
    flops = 2 * Bp * (input_dim * hidden_dim        # encoder_input
                      + hidden_dim * 2 * latent_dim  # fc_mu_logvar (both halves)
                      + latent_dim * hidden_dim      # decoder_input
                      + hidden_dim * input_dim)      # decoder_output
    transcendentals = Bp * (2 * hidden_dim + input_dim + latent_dim)
    bytes_accessed = 4 * (x.size + eps.size
                          + sum(int(p.size) for p in kernel_params)
                          + Bp * (input_dim + 2 * latent_dim))

    # TODO(synk): for large hidden_dim on v6e/v7x, cast weights to bf16 (keep f32
    # accumulation + f32 tanh/exp) to halve weight DMA and use the native bf16 MXU.
    x_hat, mu, logvar = pl.pallas_call(
        vae_kernel,
        out_shape=out_shape,
        grid=grid,
        in_specs=in_specs,
        out_specs=out_specs,
        compiler_params=pltpu.CompilerParams(
            dimension_semantics=("parallel",),
            vmem_limit_bytes=64 << 20,
        ),
        cost_estimate=pl.CostEstimate(
            flops=flops,
            transcendentals=transcendentals,
            bytes_accessed=bytes_accessed,
        ),
    )(x, eps, *kernel_params)

    if Bp != B:
        x_hat, mu, logvar = x_hat[:B], mu[:B], logvar[:B]
    return x_hat, mu, logvar


def init_params(key, input_dim, hidden_dim, latent_dim):
    """Deterministic synthetic parameter init (weights stored as (in, out))."""
    ks = jax.random.split(key, 8)

    def linear(kw, kb, fan_in, fan_out):
        bound = 1.0 / jnp.sqrt(fan_in)
        w = jax.random.uniform(kw, (fan_in, fan_out), jnp.float32, -bound, bound)
        b = jax.random.uniform(kb, (1, fan_out), jnp.float32, -bound, bound)
        return w, b

    w1, b1 = linear(ks[0], ks[1], input_dim, hidden_dim)         # encoder_input
    w2, b2 = linear(ks[2], ks[3], hidden_dim, 2 * latent_dim)    # fc_mu_logvar
    wd1, bd1 = linear(ks[4], ks[5], latent_dim, hidden_dim)      # decoder_input
    wd2, bd2 = linear(ks[6], ks[7], hidden_dim, input_dim)       # decoder_output
    return (w1, b1, w2, b2, wd1, bd1, wd2, bd2)


def vae_reference(x, eps, params):
    """Plain JAX reference for correctness check."""
    w1, b1, w2, b2, wd1, bd1, wd2, bd2 = params
    h = jnp.tanh(x @ w1 + b1)
    ml = h @ w2 + b2
    latent = eps.shape[1]
    mu, logvar = ml[:, :latent], ml[:, latent:]
    z = mu + eps * jnp.exp(0.5 * logvar)
    hd = jnp.tanh(z @ wd1 + bd1)
    x_hat = jnp.tanh(hd @ wd2 + bd2)
    return x_hat, mu, logvar


def _check(x, eps, params, **kw):
    x_hat, mu, logvar = vae_forward(x, eps, params, **kw)
    jax.block_until_ready((x_hat, mu, logvar))
    x_hat_r, mu_r, logvar_r = vae_reference(x, eps, params)
    assert x_hat.shape == x_hat_r.shape and mu.shape == mu_r.shape
    assert jnp.allclose(x_hat, x_hat_r, atol=1e-5), "x_hat mismatch"
    assert jnp.allclose(mu, mu_r, atol=1e-5), "mu mismatch"
    assert jnp.allclose(logvar, logvar_r, atol=1e-5), "logvar mismatch"


if __name__ == "__main__":
    input_dim = 32
    hidden_dim = 64
    latent_dim = 16

    root = jax.random.PRNGKey(0)
    k_x, k_eps, k_params, k_x2, k_eps2 = jax.random.split(root, 5)
    params = init_params(k_params, input_dim, hidden_dim, latent_dim)

    # Small single-tile case (batch fits one block).
    batch = 8
    x = jax.random.normal(k_x, (batch, input_dim), jnp.float32)
    eps = jax.random.normal(k_eps, (batch, latent_dim), jnp.float32)
    _check(x, eps, params)

    # Multi-tile + padding case: batch not a multiple of the tile, grid=(3,).
    batch2 = 20
    x2 = jax.random.normal(k_x2, (batch2, input_dim), jnp.float32)
    eps2 = jax.random.normal(k_eps2, (batch2, latent_dim), jnp.float32)
    _check(x2, eps2, params, tile_b=8)

    print("KERNEL_OK")
</pallas_src>

<mosaic_0001>
module attributes {stable_mosaic.version = 11 : i64} {
  func.func @vae_kernel(%arg0: i32, %arg1: memref<8x32xf32, #tpu.memory_space<vmem>>, %arg2: memref<8x16xf32, #tpu.memory_space<vmem>>, %arg3: memref<32x64xf32, #tpu.memory_space<vmem>>, %arg4: memref<1x64xf32, #tpu.memory_space<vmem>>, %arg5: memref<64x16xf32, #tpu.memory_space<vmem>>, %arg6: memref<1x16xf32, #tpu.memory_space<vmem>>, %arg7: memref<64x16xf32, #tpu.memory_space<vmem>>, %arg8: memref<1x16xf32, #tpu.memory_space<vmem>>, %arg9: memref<16x64xf32, #tpu.memory_space<vmem>>, %arg10: memref<1x64xf32, #tpu.memory_space<vmem>>, %arg11: memref<64x32xf32, #tpu.memory_space<vmem>>, %arg12: memref<1x32xf32, #tpu.memory_space<vmem>>, %arg13: memref<8x32xf32, #tpu.memory_space<vmem>>, %arg14: memref<8x16xf32, #tpu.memory_space<vmem>>, %arg15: memref<8x16xf32, #tpu.memory_space<vmem>>) attributes {dimension_semantics = [#tpu.dimension_semantics<parallel>], iteration_bounds = array<i64: 1>, scalar_prefetch = 0 : i64, scratch_operands = 0 : i64, tpu.core_type = #tpu.core_type<tc>, window_params = [{transform_indices = @transform_0, window_bounds = array<i64: 8, 32>}, {transform_indices = @transform_1, window_bounds = array<i64: 8, 16>}, {pipeline_mode = #tpu.pipeline_mode<synchronous>, transform_indices = @transform_2, window_bounds = array<i64: 32, 64>}, {pipeline_mode = #tpu.pipeline_mode<synchronous>, transform_indices = @transform_3, window_bounds = array<i64: 1, 64>}, {pipeline_mode = #tpu.pipeline_mode<synchronous>, transform_indices = @transform_4, window_bounds = array<i64: 64, 16>}, {pipeline_mode = #tpu.pipeline_mode<synchronous>, transform_indices = @transform_5, window_bounds = array<i64: 1, 16>}, {pipeline_mode = #tpu.pipeline_mode<synchronous>, transform_indices = @transform_6, window_bounds = array<i64: 64, 16>}, {pipeline_mode = #tpu.pipeline_mode<synchronous>, transform_indices = @transform_7, window_bounds = array<i64: 1, 16>}, {pipeline_mode = #tpu.pipeline_mode<synchronous>, transform_indices = @transform_8, window_bounds = array<i64: 16, 64>}, {pipeline_mode = #tpu.pipeline_mode<synchronous>, transform_indices = @transform_9, window_bounds = array<i64: 1, 64>}, {pipeline_mode = #tpu.pipeline_mode<synchronous>, transform_indices = @transform_10, window_bounds = array<i64: 64, 32>}, {pipeline_mode = #tpu.pipeline_mode<synchronous>, transform_indices = @transform_11, window_bounds = array<i64: 1, 32>}, {transform_indices = @transform_12, window_bounds = array<i64: 8, 32>}, {transform_indices = @transform_13, window_bounds = array<i64: 8, 16>}, {transform_indices = @transform_14, window_bounds = array<i64: 8, 16>}]} {
    %c0 = arith.constant 0 : index
    %c0_0 = arith.constant 0 : index
    %0 = vector.load %arg1[%c0, %c0_0] : memref<8x32xf32, #tpu.memory_space<vmem>>, vector<8x32xf32>
    %c0_1 = arith.constant 0 : index
    %c0_2 = arith.constant 0 : index
    %1 = vector.load %arg3[%c0_1, %c0_2] : memref<32x64xf32, #tpu.memory_space<vmem>>, vector<32x64xf32>
    %cst = arith.constant dense<0.000000e+00> : vector<8x64xf32>
    %2 = tpu.matmul %0, %1, %cst {dimension_numbers = #tpu.dot_dimension_numbers<[1], [0], [0], [1], [0, 0, 1, 1], [], []>} : vector<8x32xf32>, vector<32x64xf32>, vector<8x64xf32> -> vector<8x64xf32>
    %c0_3 = arith.constant 0 : index
    %c0_4 = arith.constant 0 : index
    %3 = vector.load %arg4[%c0_3, %c0_4] : memref<1x64xf32, #tpu.memory_space<vmem>>, vector<1x64xf32>
    %4 = vector.broadcast %3 : vector<1x64xf32> to vector<8x64xf32>
    %5 = arith.addf %2, %4 : vector<8x64xf32>
    %6 = math.tanh %5 : vector<8x64xf32>
    %c0_5 = arith.constant 0 : index
    %c0_6 = arith.constant 0 : index
    %7 = vector.load %arg5[%c0_5, %c0_6] : memref<64x16xf32, #tpu.memory_space<vmem>>, vector<64x16xf32>
    %cst_7 = arith.constant dense<0.000000e+00> : vector<8x16xf32>
    %8 = tpu.matmul %6, %7, %cst_7 {dimension_numbers = #tpu.dot_dimension_numbers<[1], [0], [0], [1], [0, 0, 1, 1], [], []>} : vector<8x64xf32>, vector<64x16xf32>, vector<8x16xf32> -> vector<8x16xf32>
    %c0_8 = arith.constant 0 : index
    %c0_9 = arith.constant 0 : index
    %9 = vector.load %arg6[%c0_8, %c0_9] : memref<1x16xf32, #tpu.memory_space<vmem>>, vector<1x16xf32>
    %10 = vector.broadcast %9 : vector<1x16xf32> to vector<8x16xf32>
    %11 = arith.addf %8, %10 : vector<8x16xf32>
    %c0_10 = arith.constant 0 : index
    %c0_11 = arith.constant 0 : index
    %12 = vector.load %arg7[%c0_10, %c0_11] : memref<64x16xf32, #tpu.memory_space<vmem>>, vector<64x16xf32>
    %cst_12 = arith.constant dense<0.000000e+00> : vector<8x16xf32>
    %13 = tpu.matmul %6, %12, %cst_12 {dimension_numbers = #tpu.dot_dimension_numbers<[1], [0], [0], [1], [0, 0, 1, 1], [], []>} : vector<8x64xf32>, vector<64x16xf32>, vector<8x16xf32> -> vector<8x16xf32>
    %c0_13 = arith.constant 0 : index
    %c0_14 = arith.constant 0 : index
    %14 = vector.load %arg8[%c0_13, %c0_14] : memref<1x16xf32, #tpu.memory_space<vmem>>, vector<1x16xf32>
    %15 = vector.broadcast %14 : vector<1x16xf32> to vector<8x16xf32>
    %16 = arith.addf %13, %15 : vector<8x16xf32>
    %c0_15 = arith.constant 0 : index
    %c0_16 = arith.constant 0 : index
    %17 = vector.load %arg2[%c0_15, %c0_16] : memref<8x16xf32, #tpu.memory_space<vmem>>, vector<8x16xf32>
    %cst_17 = arith.constant 5.000000e-01 : f32
    %18 = vector.broadcast %cst_17 : f32 to vector<8x16xf32>
    %19 = arith.mulf %18, %16 : vector<8x16xf32>
    %20 = math.exp %19 : vector<8x16xf32>
    %21 = arith.mulf %17, %20 : vector<8x16xf32>
    %22 = arith.addf %11, %21 : vector<8x16xf32>
    %c0_18 = arith.constant 0 : index
    %c0_19 = arith.constant 0 : index
    %23 = vector.load %arg9[%c0_18, %c0_19] : memref<16x64xf32, #tpu.memory_space<vmem>>, vector<16x64xf32>
    %cst_20 = arith.constant dense<0.000000e+00> : vector<8x64xf32>
    %24 = tpu.matmul %22, %23, %cst_20 {dimension_numbers = #tpu.dot_dimension_numbers<[1], [0], [0], [1], [0, 0, 1, 1], [], []>} : vector<8x16xf32>, vector<16x64xf32>, vector<8x64xf32> -> vector<8x64xf32>
    %c0_21 = arith.constant 0 : index
    %c0_22 = arith.constant 0 : index
    %25 = vector.load %arg10[%c0_21, %c0_22] : memref<1x64xf32, #tpu.memory_space<vmem>>, vector<1x64xf32>
    %26 = vector.broadcast %25 : vector<1x64xf32> to vector<8x64xf32>
    %27 = arith.addf %24, %26 : vector<8x64xf32>
    %28 = math.tanh %27 : vector<8x64xf32>
    %c0_23 = arith.constant 0 : index
    %c0_24 = arith.constant 0 : index
    %29 = vector.load %arg11[%c0_23, %c0_24] : memref<64x32xf32, #tpu.memory_space<vmem>>, vector<64x32xf32>
    %cst_25 = arith.constant dense<0.000000e+00> : vector<8x32xf32>
    %30 = tpu.matmul %28, %29, %cst_25 {dimension_numbers = #tpu.dot_dimension_numbers<[1], [0], [0], [1], [0, 0, 1, 1], [], []>} : vector<8x64xf32>, vector<64x32xf32>, vector<8x32xf32> -> vector<8x32xf32>
    %c0_26 = arith.constant 0 : index
    %c0_27 = arith.constant 0 : index
    %31 = vector.load %arg12[%c0_26, %c0_27] : memref<1x32xf32, #tpu.memory_space<vmem>>, vector<1x32xf32>
    %32 = vector.broadcast %31 : vector<1x32xf32> to vector<8x32xf32>
    %33 = arith.addf %30, %32 : vector<8x32xf32>
    %34 = math.tanh %33 : vector<8x32xf32>
    %c0_28 = arith.constant 0 : index
    %c0_29 = arith.constant 0 : index
    %35 = vector.load %arg13[%c0_28, %c0_29] : memref<8x32xf32, #tpu.memory_space<vmem>>, vector<8x32xf32>
    tpu.vector_store %arg13[%c0_28, %c0_29], %34 {strides = array<i32>} : memref<8x32xf32, #tpu.memory_space<vmem>>, vector<8x32xf32>,
    %c0_30 = arith.constant 0 : index
    %c0_31 = arith.constant 0 : index
    %36 = vector.load %arg14[%c0_30, %c0_31] : memref<8x16xf32, #tpu.memory_space<vmem>>, vector<8x16xf32>
    tpu.vector_store %arg14[%c0_30, %c0_31], %11 {strides = array<i32>} : memref<8x16xf32, #tpu.memory_space<vmem>>, vector<8x16xf32>,
    %c0_32 = arith.constant 0 : index
    %c0_33 = arith.constant 0 : index
    %37 = vector.load %arg15[%c0_32, %c0_33] : memref<8x16xf32, #tpu.memory_space<vmem>>, vector<8x16xf32>
    tpu.vector_store %arg15[%c0_32, %c0_33], %16 {strides = array<i32>} : memref<8x16xf32, #tpu.memory_space<vmem>>, vector<8x16xf32>,
    return
  }
  func.func @transform_0(%arg0: i32) -> (i32, i32) {
    %c0_i32 = arith.constant 0 : i32
    %c0_i32_0 = arith.constant 0 : i32
    return %arg0, %c0_i32 : i32, i32
  }
  func.func @transform_1(%arg0: i32) -> (i32, i32) {
    %c0_i32 = arith.constant 0 : i32
    %c0_i32_0 = arith.constant 0 : i32
    return %arg0, %c0_i32 : i32, i32
  }
  func.func @transform_2(%arg0: i32) -> (i32, i32) {
    %c0_i32 = arith.constant 0 : i32
    %c0_i32_0 = arith.constant 0 : i32
    %c0_i32_1 = arith.constant 0 : i32
    return %c0_i32, %c0_i32_0 : i32, i32
  }
  func.func @transform_3(%arg0: i32) -> (i32, i32) {
    %c0_i32 = arith.constant 0 : i32
    %c0_i32_0 = arith.constant 0 : i32
    %c0_i32_1 = arith.constant 0 : i32
    return %c0_i32, %c0_i32_0 : i32, i32
  }
  func.func @transform_4(%arg0: i32) -> (i32, i32) {
    %c0_i32 = arith.constant 0 : i32
    %c0_i32_0 = arith.constant 0 : i32
    %c0_i32_1 = arith.constant 0 : i32
    return %c0_i32, %c0_i32_0 : i32, i32
  }
  func.func @transform_5(%arg0: i32) -> (i32, i32) {
    %c0_i32 = arith.constant 0 : i32
    %c0_i32_0 = arith.constant 0 : i32
    %c0_i32_1 = arith.constant 0 : i32
    return %c0_i32, %c0_i32_0 : i32, i32
  }
  func.func @transform_6(%arg0: i32) -> (i32, i32) {
    %c0_i32 = arith.constant 0 : i32
    %c0_i32_0 = arith.constant 0 : i32
    %c0_i32_1 = arith.constant 0 : i32
    return %c0_i32, %c0_i32_0 : i32, i32
  }
  func.func @transform_7(%arg0: i32) -> (i32, i32) {
    %c0_i32 = arith.constant 0 : i32
    %c0_i32_0 = arith.constant 0 : i32
    %c0_i32_1 = arith.constant 0 : i32
    return %c0_i32, %c0_i32_0 : i32, i32
  }
  func.func @transform_8(%arg0: i32) -> (i32, i32) {
    %c0_i32 = arith.constant 0 : i32
    %c0_i32_0 = arith.constant 0 : i32
    %c0_i32_1 = arith.constant 0 : i32
    return %c0_i32, %c0_i32_0 : i32, i32
  }
  func.func @transform_9(%arg0: i32) -> (i32, i32) {
    %c0_i32 = arith.constant 0 : i32
    %c0_i32_0 = arith.constant 0 : i32
    %c0_i32_1 = arith.constant 0 : i32
    return %c0_i32, %c0_i32_0 : i32, i32
  }
  func.func @transform_10(%arg0: i32) -> (i32, i32) {
    %c0_i32 = arith.constant 0 : i32
    %c0_i32_0 = arith.constant 0 : i32
    %c0_i32_1 = arith.constant 0 : i32
    return %c0_i32, %c0_i32_0 : i32, i32
  }
  func.func @transform_11(%arg0: i32) -> (i32, i32) {
    %c0_i32 = arith.constant 0 : i32
    %c0_i32_0 = arith.constant 0 : i32
    %c0_i32_1 = arith.constant 0 : i32
    return %c0_i32, %c0_i32_0 : i32, i32
  }
  func.func @transform_12(%arg0: i32) -> (i32, i32) {
    %c0_i32 = arith.constant 0 : i32
    %c0_i32_0 = arith.constant 0 : i32
    return %arg0, %c0_i32 : i32, i32
  }
  func.func @transform_13(%arg0: i32) -> (i32, i32) {
    %c0_i32 = arith.constant 0 : i32
    %c0_i32_0 = arith.constant 0 : i32
    return %arg0, %c0_i32 : i32, i32
  }
  func.func @transform_14(%arg0: i32) -> (i32, i32) {
    %c0_i32 = arith.constant 0 : i32
    %c0_i32_0 = arith.constant 0 : i32
    return %arg0, %c0_i32 : i32, i32
  }
}

</mosaic_0001>

<bundles_post_ra>
// kernel: tpu_custom_call.1
= control target key start
LH: loop header
LB: loop body
LE: loop exit
PB: predicated region body
PF: predicated region fallthrough
CT: control target
= control target key end

     0   :  { %20 = vsyncpa [#allocation3], 0  ;;  %s1547_s0 = inlined_call_operand.hbm [shape: f32[8,32], index: 0, kind: input, shape index: {}]   ;;  %s1548_s1 = inlined_call_operand.hbm [shape: f32[8,16], index: 1, kind: input, shape index: {}]   ;;  %s1549_s2 = inlined_call_operand.hbm [shape: f32[32,64], index: 2, kind: input, shape index: {}]   ;;  %s1550_s3 = inlined_call_operand.hbm [shape: f32[1,64], index: 3, kind: input, shape index: {}]   ;;  %s1551_s4 = inlined_call_operand.hbm [shape: f32[64,16], index: 4, kind: input, shape index: {}]   ;;  %s1552_s5 = inlined_call_operand.hbm [shape: f32[1,16], index: 5, kind: input, shape index: {}]   ;;  %s1553_s6 = inlined_call_operand.hbm [shape: f32[64,16], index: 6, kind: input, shape index: {}]   ;;  %s1554_s7 = inlined_call_operand.hbm [shape: f32[1,16], index: 7, kind: input, shape index: {}]   ;;  %s1555_s8 = inlined_call_operand.hbm [shape: f32[16,64], index: 8, kind: input, shape index: {}]   ;;  %s1556_s9 = inlined_call_operand.hbm [shape: f32[1,64], index: 9, kind: input, shape index: {}]   ;;  %s1557_s10 = inlined_call_operand.hbm [shape: f32[64,32], index: 10, kind: input, shape index: {}]   ;;  %s1558_s11 = inlined_call_operand.hbm [shape: f32[1,32], index: 11, kind: input, shape index: {}]   ;;  %s1559_s12 = inlined_call_operand.hbm [shape: f32[8,32], index: 12, kind: output, shape index: {0}]   ;;  %s1560_s13 = inlined_call_operand.hbm [shape: f32[8,16], index: 13, kind: output, shape index: {1}]   ;;  %s1561_s14 = inlined_call_operand.hbm [shape: f32[8,16], index: 14, kind: output, shape index: {2}]  }
   0x1   :  { %21 = vsyncpa [#allocation6], 0 }
   0x2   :  { %22 = vsyncpa [#allocation9], 0 }
   0x3   :  { %23 = vsyncpa [#allocation12], 0 }
   0x4   :  { %24 = vsyncpa [#allocation15], 0 }
   0x5   :  { %25 = vsyncpa [#allocation18], 0 }
   0x6   :  { %26 = vsyncpa [#allocation21], 0 }
   0x7   :  { %27 = vsyncpa [#allocation4], 0 }
   0x8   :  { %28 = vsyncpa [#allocation24], 0  ;;  %s1227_s29 = smov [#allocation5]   ;;  %s1228_s15 = smov [#allocation8]  }
   0x9   :  { %s45_s30 = sshll.u32 %s1227_s29, 4  ;;  %s67_s16 = sshll.u32 %s1228_s15, 4  ;;  %s46_s30 = int_to_ptr.vmem [resolvable:$true] %s45_s30  ;;  %s68_s16 = int_to_ptr.vmem [resolvable:$true] %s67_s16 }
   0xa   :  { %s879_s19 = scalar_lea.hbm %s1548_s1, 128 }
   0xb   :  { %p880_p0 = scmp.ne.s32.totalorder %s1548_s1, %s879_s19  ;;  %p883_p1 = scmp.lt.u32.totalorder %s879_s19, %s1548_s1 }
   0xd   :  { %p885_p2 = pnand %p883_p1, %p880_p0 }
   0xf   :  { %888 = shalt.err (!%p885_p2)
}
  0x10   :  { %s889_s24 = scalar_lea.vmem %s46_s30, 128  ;;  %p894_p4 = scmp.lt.s32.totalorder %s46_s30, %s46_s30 }
  0x11   :  { %p890_p3 = scmp.ne.s32.totalorder %s46_s30, %s889_s24  ;;  %p895_p5 = scmp.lt.s32.totalorder %s889_s24, %s889_s24 }
  0x13   :  { %p896_p6 = por %p895_p5, %p894_p4 }
  0x15   :  { %p897_p7 = pnand %p896_p6, %p890_p3 }
  0x17   :  { %900 = shalt.err (!%p897_p7)
}
  0x18   :  { %48 = dma.hbm_to_vmem [thread:$0]  %s1548_s1, 128, %s46_s30, [#allocation6]  }
  0x19   :  { %s901_s29 = scalar_lea.hbm %s1550_s3, 16 }
  0x1a   :  { %p902_p8 = scmp.ne.s32.totalorder %s1550_s3, %s901_s29  ;;  %p905_p9 = scmp.lt.u32.totalorder %s901_s29, %s1550_s3 }
  0x1c   :  { %p907_p10 = pnand %p905_p9, %p902_p8 }
  0x1e   :  { %910 = shalt.err (!%p907_p10)
}
  0x1f   :  { %s911_s20 = scalar_lea.vmem %s68_s16, 16  ;;  %s915_s21 = scalar_lea.vmem %s68_s16, 32 }
  0x20   :  { %p912_p11 = scmp.ne.s32.totalorder %s68_s16, %s911_s20  ;;  %p916_p12 = scmp.lt.s32.totalorder %s68_s16, %s68_s16 }
  0x21   :  { %p917_p13 = scmp.lt.s32.totalorder %s915_s21, %s911_s20 }
  0x23   :  { %p918_p0 = por %p917_p13, %p916_p12 }
  0x25   :  { %p919_p1 = pnand %p918_p0, %p912_p11 }
  0x27   :  { %922 = shalt.err (!%p919_p1)
}
  0x28   :  { %70 = dma.hbm_to_vmem [thread:$0]  %s1550_s3, 16, %s68_s16, [#allocation9]  }
  0x29   :  { %s1229_s22 = smov [#allocation11]   ;;  %s1230_s24 = smov [#allocation14]  }
  0x2a   :  { %s89_s23 = sshll.u32 %s1229_s22, 4  ;;  %s111_s25 = sshll.u32 %s1230_s24, 4  ;;  %s90_s23 = int_to_ptr.vmem [resolvable:$true] %s89_s23  ;;  %s112_s25 = int_to_ptr.vmem [resolvable:$true] %s111_s25 }
  0x2b   :  { %s923_s28 = scalar_lea.hbm %s1552_s5, 16 }
  0x2c   :  { %p924_p2 = scmp.ne.s32.totalorder %s1552_s5, %s923_s28  ;;  %p927_p3 = scmp.lt.u32.totalorder %s923_s28, %s1552_s5 }
  0x2e   :  { %p929_p4 = pnand %p927_p3, %p924_p2 }
  0x30   :  { %932 = shalt.err (!%p929_p4)
}
  0x31   :  { %s933_s3 = scalar_lea.vmem %s90_s23, 16  ;;  %s937_s16 = scalar_lea.vmem %s90_s23, 32 }
  0x32   :  { %p934_p5 = scmp.ne.s32.totalorder %s90_s23, %s933_s3  ;;  %p938_p6 = scmp.lt.s32.totalorder %s90_s23, %s90_s23 }
  0x33   :  { %p939_p7 = scmp.lt.s32.totalorder %s937_s16, %s933_s3 }
  0x35   :  { %p940_p8 = por %p939_p7, %p938_p6 }
  0x37   :  { %p941_p9 = pnand %p940_p8, %p934_p5 }
  0x39   :  { %944 = shalt.err (!%p941_p9)
}
  0x3a   :  { %92 = dma.hbm_to_vmem [thread:$0]  %s1552_s5, 16, %s90_s23, [#allocation12]  }
  0x3b   :  { %s945_s30 = scalar_lea.hbm %s1554_s7, 16 }
  0x3c   :  { %p946_p10 = scmp.ne.s32.totalorder %s1554_s7, %s945_s30  ;;  %p949_p11 = scmp.lt.u32.totalorder %s945_s30, %s1554_s7 }
  0x3e   :  { %p951_p12 = pnand %p949_p11, %p946_p10 }
  0x40   :  { %954 = shalt.err (!%p951_p12)
}
  0x41   :  { %s955_s28 = scalar_lea.vmem %s112_s25, 16  ;;  %s959_s29 = scalar_lea.vmem %s112_s25, 32 }
  0x42   :  { %p956_p13 = scmp.ne.s32.totalorder %s112_s25, %s955_s28  ;;  %p960_p0 = scmp.lt.s32.totalorder %s112_s25, %s112_s25 }
  0x43   :  { %p961_p1 = scmp.lt.s32.totalorder %s959_s29, %s955_s28 }
  0x45   :  { %p962_p2 = por %p961_p1, %p960_p0 }
  0x47   :  { %p963_p3 = pnand %p962_p2, %p956_p13 }
  0x49   :  { %966 = shalt.err (!%p963_p3)
}
  0x4a   :  { %114 = dma.hbm_to_vmem [thread:$0]  %s1554_s7, 16, %s112_s25, [#allocation15]  }
  0x4b   :  { %s1231_s15 = smov [#allocation17]   ;;  %s1232_s18 = smov [#allocation2]  }
  0x4c   :  { %s133_s17 = sshll.u32 %s1231_s15, 4  ;;  %s35_s3 = sshll.u32 %s1232_s18, 4  ;;  %s134_s17 = int_to_ptr.vmem [resolvable:$true] %s133_s17  ;;  %s36_s3 = int_to_ptr.vmem [resolvable:$true] %s35_s3 }
  0x4d   :  { %s967_s20 = scalar_lea.hbm %s1556_s9, 16 }
  0x4e   :  { %p968_p4 = scmp.ne.s32.totalorder %s1556_s9, %s967_s20  ;;  %p971_p5 = scmp.lt.u32.totalorder %s967_s20, %s1556_s9 }
  0x50   :  { %p973_p6 = pnand %p971_p5, %p968_p4 }
  0x52   :  { %976 = shalt.err (!%p973_p6)
}
  0x53   :  { %s977_s7 = scalar_lea.vmem %s134_s17, 16  ;;  %s981_s25 = scalar_lea.vmem %s134_s17, 32 }
  0x54   :  { %p978_p7 = scmp.ne.s32.totalorder %s134_s17, %s977_s7  ;;  %p982_p8 = scmp.lt.s32.totalorder %s134_s17, %s134_s17 }
  0x55   :  { %p983_p9 = scmp.lt.s32.totalorder %s981_s25, %s977_s7 }
  0x57   :  { %p984_p10 = por %p983_p9, %p982_p8 }
  0x59   :  { %p985_p11 = pnand %p984_p10, %p978_p7 }
  0x5b   :  { %988 = shalt.err (!%p985_p11)
}
  0x5c   :  { %136 = dma.hbm_to_vmem [thread:$0]  %s1556_s9, 16, %s134_s17, [#allocation18]  }
  0x5d   :  { %s989_s29 = scalar_lea.hbm %s1547_s0, 128 }
  0x5e   :  { %p990_p12 = scmp.ne.s32.totalorder %s1547_s0, %s989_s29  ;;  %p993_p13 = scmp.lt.u32.totalorder %s989_s29, %s1547_s0 }
  0x60   :  { %p995_p0 = pnand %p993_p13, %p990_p12 }
  0x62   :  { %998 = shalt.err (!%p995_p0)
}
  0x63   :  { %s999_s16 = scalar_lea.vmem %s36_s3, 128  ;;  %p1004_p2 = scmp.lt.s32.totalorder %s36_s3, %s36_s3 }
  0x64   :  { %p1000_p1 = scmp.ne.s32.totalorder %s36_s3, %s999_s16  ;;  %p1005_p3 = scmp.lt.s32.totalorder %s999_s16, %s999_s16 }
  0x66   :  { %p1006_p4 = por %p1005_p3, %p1004_p2 }
  0x68   :  { %p1007_p5 = pnand %p1006_p4, %p1000_p1 }
  0x6a   :  { %1010 = shalt.err (!%p1007_p5)
}
  0x6b   :  { %38 = dma.hbm_to_vmem [thread:$0]  %s1547_s0, 128, %s36_s3, [#allocation3]  }
  0x6c   :  { %s1233_s19 = smov [#allocation7]   ;;  %s1011_s30 = scalar_lea.hbm %s1549_s2, 512 }
  0x6d   :  { %s54_s20 = sshll.u32 %s1233_s19, 4  ;;  %p1012_p6 = scmp.ne.s32.totalorder %s1549_s2, %s1011_s30  ;;  %s55_s20 = int_to_ptr.vmem [resolvable:$true] %s54_s20 }
  0x6e   :  { %p1015_p7 = scmp.lt.u32.totalorder %s1011_s30, %s1549_s2 }
  0x70   :  { %p1017_p8 = pnand %p1015_p7, %p1012_p6 }
  0x72   :  { %1020 = shalt.err (!%p1017_p8)
}
  0x73   :  { %s1021_s26 = scalar_lea.vmem %s55_s20, 512  ;;  %p1026_p10 = scmp.lt.s32.totalorder %s55_s20, %s55_s20 }
  0x74   :  { %p1022_p9 = scmp.ne.s32.totalorder %s55_s20, %s1021_s26  ;;  %p1027_p11 = scmp.lt.s32.totalorder %s1021_s26, %s1021_s26 }
  0x76   :  { %p1028_p12 = por %p1027_p11, %p1026_p10 }
  0x78   :  { %p1029_p13 = pnand %p1028_p12, %p1022_p9 }
  0x7a   :  { %1032 = shalt.err (!%p1029_p13)
}
  0x7b   :  { %s1234_s0 = smov 128   ;;  %s1235_s3 = smov 8  }
  0x7c   :  { %60 = dma.hbm_to_vmem [thread:$0]  %s1549_s2, 512, %s55_s20, [#allocation6], %s1234_s0, %s1234_s0, %s1235_s3  }
  0x7d   :  { %s1236_s29 = smov [#allocation10]   ;;  %s1237_s23 = smov [#allocation13]  }
  0x7e   :  { %s76_s5 = sshll.u32 %s1236_s29, 4  ;;  %s98_s15 = sshll.u32 %s1237_s23, 4  ;;  %s77_s5 = int_to_ptr.vmem [resolvable:$true] %s76_s5  ;;  %s99_s15 = int_to_ptr.vmem [resolvable:$true] %s98_s15 }
  0x7f   :  { %s1033_s9 = scalar_lea.hbm %s1551_s4, 1024 }
  0x80   :  { %p1034_p0 = scmp.ne.s32.totalorder %s1551_s4, %s1033_s9  ;;  %p1037_p1 = scmp.lt.u32.totalorder %s1033_s9, %s1551_s4 }
  0x82   :  { %p1039_p2 = pnand %p1037_p1, %p1034_p0 }
  0x84   :  { %1042 = shalt.err (!%p1039_p2)
}
  0x85   :  { %s1043_s2 = scalar_lea.vmem %s77_s5, 1024  ;;  %p1048_p4 = scmp.lt.s32.totalorder %s77_s5, %s77_s5 }
  0x86   :  { %p1044_p3 = scmp.ne.s32.totalorder %s77_s5, %s1043_s2  ;;  %p1049_p5 = scmp.lt.s32.totalorder %s1043_s2, %s1043_s2 }
  0x88   :  { %p1050_p6 = por %p1049_p5, %p1048_p4 }
  0x8a   :  { %p1051_p7 = pnand %p1050_p6, %p1044_p3 }
  0x8c   :  { %1054 = shalt.err (!%p1051_p7)
}
  0x8d   :  { %82 = dma.hbm_to_vmem [thread:$0]  %s1551_s4, 1024, %s77_s5, [#allocation9], %s1234_s0, %s1234_s0, %s1235_s3  }
  0x8e   :  { %s1055_s25 = scalar_lea.hbm %s1553_s6, 1024 }
  0x8f   :  { %p1056_p8 = scmp.ne.s32.totalorder %s1553_s6, %s1055_s25  ;;  %p1059_p9 = scmp.lt.u32.totalorder %s1055_s25, %s1553_s6 }
  0x91   :  { %p1061_p10 = pnand %p1059_p9, %p1056_p8 }
  0x93   :  { %1064 = shalt.err (!%p1061_p10)
}
  0x94   :  { %s1065_s29 = scalar_lea.vmem %s99_s15, 1024  ;;  %p1070_p12 = scmp.lt.s32.totalorder %s99_s15, %s99_s15 }
  0x95   :  { %p1066_p11 = scmp.ne.s32.totalorder %s99_s15, %s1065_s29  ;;  %p1071_p13 = scmp.lt.s32.totalorder %s1065_s29, %s1065_s29 }
  0x97   :  { %p1072_p0 = por %p1071_p13, %p1070_p12 }
  0x99   :  { %p1073_p1 = pnand %p1072_p0, %p1066_p11 }
  0x9b   :  { %1076 = shalt.err (!%p1073_p1)
}
  0x9c   :  { %104 = dma.hbm_to_vmem [thread:$0]  %s1553_s6, 1024, %s99_s15, [#allocation12], %s1234_s0, %s1234_s0, %s1235_s3  }
  0x9d   :  { %s1238_s23 = smov [#allocation16]   ;;  %s1239_s16 = smov [#allocation19]  }
  0x9e   :  { %s120_s18 = sshll.u32 %s1238_s23, 4  ;;  %s142_s9 = sshll.u32 %s1239_s16, 4  ;;  %s121_s18 = int_to_ptr.vmem [resolvable:$true] %s120_s18  ;;  %s143_s9 = int_to_ptr.vmem [resolvable:$true] %s142_s9 }
  0x9f   :  { %s1077_s21 = scalar_lea.hbm %s1555_s8, 256 }
  0xa0   :  { %p1078_p2 = scmp.ne.s32.totalorder %s1555_s8, %s1077_s21  ;;  %p1081_p3 = scmp.lt.u32.totalorder %s1077_s21, %s1555_s8 }
  0xa2   :  { %p1083_p4 = pnand %p1081_p3, %p1078_p2 }
  0xa4   :  { %1086 = shalt.err (!%p1083_p4)
}
  0xa5   :  { %s1087_s6 = scalar_lea.vmem %s121_s18, 256  ;;  %p1092_p6 = scmp.lt.s32.totalorder %s121_s18, %s121_s18 }
  0xa6   :  { %p1088_p5 = scmp.ne.s32.totalorder %s121_s18, %s1087_s6  ;;  %p1093_p7 = scmp.lt.s32.totalorder %s1087_s6, %s1087_s6 }
  0xa8   :  { %p1094_p8 = por %p1093_p7, %p1092_p6 }
  0xaa   :  { %p1095_p9 = pnand %p1094_p8, %p1088_p5 }
  0xac   :  { %1098 = shalt.err (!%p1095_p9)
}
  0xad   :  { %126 = dma.hbm_to_vmem [thread:$0]  %s1555_s8, 256, %s121_s18, [#allocation15], %s1234_s0, %s1234_s0, %s1235_s3  }
  0xae   :  { %s1099_s24 = scalar_lea.hbm %s1557_s10, 1024 }
  0xaf   :  { %p1100_p10 = scmp.ne.s32.totalorder %s1557_s10, %s1099_s24  ;;  %p1103_p11 = scmp.lt.u32.totalorder %s1099_s24, %s1557_s10 }
  0xb1   :  { %p1105_p12 = pnand %p1103_p11, %p1100_p10 }
  0xb3   :  { %1108 = shalt.err (!%p1105_p12)
}
  0xb4   :  { %s1109_s4 = scalar_lea.vmem %s143_s9, 1024  ;;  %p1114_p0 = scmp.lt.s32.totalorder %s143_s9, %s143_s9 }
  0xb5   :  { %p1110_p13 = scmp.ne.s32.totalorder %s143_s9, %s1109_s4  ;;  %p1115_p1 = scmp.lt.s32.totalorder %s1109_s4, %s1109_s4 }
  0xb7   :  { %p1116_p2 = por %p1115_p1, %p1114_p0 }
  0xb9   :  { %p1117_p3 = pnand %p1116_p2, %p1110_p13 }
  0xbb   :  { %1120 = shalt.err (!%p1117_p3)
}
  0xbc   :  { %148 = dma.hbm_to_vmem [thread:$0]  %s1557_s10, 1024, %s143_s9, [#allocation18], %s1234_s0, %s1234_s0, %s1235_s3  }
  0xbd   :  { %s1240_s23 = smov [#allocation20]   ;;  %s1121_s19 = scalar_lea.hbm %s1558_s11, 16 }
  0xbe   :  { %s155_s18 = sshll.u32 %s1240_s23, 4  ;;  %p1122_p4 = scmp.ne.s32.totalorder %s1558_s11, %s1121_s19  ;;  %s156_s18 = int_to_ptr.vmem [resolvable:$true] %s155_s18 }
  0xbf   :  { %p1125_p5 = scmp.lt.u32.totalorder %s1121_s19, %s1558_s11 }
  0xc1   :  { %p1127_p6 = pnand %p1125_p5, %p1122_p4 }
  0xc3   :  { %1130 = shalt.err (!%p1127_p6)
}
  0xc4   :  { %s1131_s30 = scalar_lea.vmem %s156_s18, 16  ;;  %s1135_s10 = scalar_lea.vmem %s156_s18, 32 }
  0xc5   :  { %p1132_p7 = scmp.ne.s32.totalorder %s156_s18, %s1131_s30  ;;  %p1136_p8 = scmp.lt.s32.totalorder %s156_s18, %s156_s18 }
  0xc6   :  { %p1137_p9 = scmp.lt.s32.totalorder %s1135_s10, %s1131_s30 }
  0xc8   :  { %p1138_p10 = por %p1137_p9, %p1136_p8 }
  0xca   :  { %p1139_p11 = pnand %p1138_p10, %p1132_p7 }
  0xcc   :  { %1142 = shalt.err (!%p1139_p11)
}
  0xcd   :  { %158 = dma.hbm_to_vmem [thread:$0]  %s1558_s11, 16, %s156_s18, [#allocation21]  }
  0xce   :  { %1209 = dma.done.wait [#allocation3], 128  }
  0xcf   :  { %1210 = vsyncadd [#allocation3], 4294967168 }
  0xd0   :  { %1211 = dma.done.wait [#allocation6], 640  }
  0xd1   :  { %1212 = vsyncadd [#allocation6], 4294966656 }
  0xd2   :  { %1213 = dma.done.wait [#allocation9], 1040  }
  0xd3   :  { %1214 = vsyncadd [#allocation9], 4294966256 }
  0xd4   :  { %1215 = dma.done.wait [#allocation12], 1040  }
  0xd5   :  { %1216 = vsyncadd [#allocation12], 4294966256 }
  0xd6   :  { %1217 = dma.done.wait [#allocation15], 272  }
  0xd7   :  { %1218 = vsyncadd [#allocation15], 4294967024 }
  0xd8   :  { %1219 = dma.done.wait [#allocation18], 1040  }
  0xd9   :  { %1220 = vsyncadd [#allocation18], 4294966256 }
  0xda   :  { %1221 = dma.done.wait [#allocation21], 16  }
  0xdb   :  { %1222 = vsyncadd [#allocation21], 4294967280  ;;  %v1241_v0 = vmov 0.0|0.0   ;;  %vm1242_vm0 = vmmov 0   ;;  %v1243_v1 = vmov 0.0   ;;  %v196_v2 = vld [vmem:[#allocation7] sm:$0xff] }
  0xdc   :  { %806 = vmatprep.subr.bf16.mxu0 %v1241_v0  ;;  %739 = vmatprep.mubr.msk.f32.mxu0 %vm1242_vm0, %v1243_v1  ;;  %v197_v3 = vld [vmem:[#allocation7 + $0x8] sm:$0xff]  ;;  %v198_v4 = vld [vmem:[#allocation7 + $0x10] sm:$0xff]  ;;  %v199_v6 = vld [vmem:[#allocation7 + $0x18] sm:$0xff]  ;;  %vm207_vm1 = vcmask 261120   ;;  %vm297_vm2 = vcmask 523264   ;;  %vm471_vm3 = vcmask 130048  }
  0xdd   :  { %812 = vmatprep.subr.bf16.mxu1 %v1241_v0  ;;  %758 = vmatprep.mubr.msk.f32.mxu1 %vm1242_vm0, %v1243_v1  ;;  %v807_v5 = vpack.c.bf16 %v197_v3, %v196_v2  ;;  %v282_v7 = vld [vmem:[#allocation10] sm:$0xff]  ;;  %v283_v8 = vld [vmem:[#allocation10 + $0x8] sm:$0xff]  ;;  %v810_v9 = vpack.c.bf16 %v199_v6, %v198_v4  ;;  %v284_v15 = vld [vmem:[#allocation10 + $0x10] sm:$0xff]  ;;  %s1244_s11 = smov [#allocation23]  }
  0xde   :  { %v813_v10 = vpack.c.bf16 %v283_v8, %v282_v7  ;;  %v371_v11 = vld [vmem:[#allocation13] sm:$0xff]  ;;  %v372_v12 = vld [vmem:[#allocation13 + $0x8] sm:$0xff]  ;;  %v285_v16 = vld [vmem:[#allocation10 + $0x18] sm:$0xff]  ;;  %s654_s9 = sshll.u32 %s1244_s11, 4  ;;  %s655_s9 = int_to_ptr.vmem [resolvable:$true] %s654_s9 }
  0xdf   :  { %808 = vmatpush3.bf16.msra.mxu0 %v807_v5  ;;  %v195_v13 = vld [vmem:[#allocation2] sm:$0xff]  ;;  %v825_v14 = vpack.c.bf16 %v372_v12, %v371_v11  ;;  %v816_v18 = vpack.c.bf16 %v285_v16, %v284_v15  ;;  %v374_v19 = vld [vmem:[#allocation13 + $0x18] sm:$0xff]  ;;  %v375_v23 = vld [vmem:[#allocation13 + $0x20] sm:$0xff]  ;;  %s1143_s6 = scalar_lea.vmem %s655_s9, 128  ;;  %p1148_p13 = scmp.lt.s32.totalorder %s655_s9, %s655_s9 }
  0xe0   :  { %809 = vmatprep.subr.bf16.mxu0 %v1241_v0  ;;  %814 = vmatpush3.bf16.msra.mxu1 %v813_v10  ;;  %v373_v17 = vld [vmem:[#allocation13 + $0x10] sm:$0xff]  ;;  %v286_v21 = vld [vmem:[#allocation10 + $0x20] sm:$0xff]  ;;  %v287_v22 = vld [vmem:[#allocation10 + $0x28] sm:$0xff]  ;;  %p1144_p12 = scmp.ne.s32.totalorder %s655_s9, %s1143_s6  ;;  %p1149_p0 = scmp.lt.s32.totalorder %s1143_s6, %s1143_s6 }
  0xe1   :  { %815 = vmatprep.subr.bf16.mxu1 %v1241_v0  ;;  %v828_v20 = vpack.c.bf16 %v374_v19, %v373_v17  ;;  %v819_v24 = vpack.c.bf16 %v287_v22, %v286_v21  ;;  %v376_v25 = vld [vmem:[#allocation13 + $0x28] sm:$0xff]  ;;  %v289_v27 = vld [vmem:[#allocation10 + $0x38] sm:$0xff]  ;;  %v688_v44 = vld [vmem:[#allocation11] ss:$0 sm:$0xff] }
  0xe2   :  { %v288_v26 = vld [vmem:[#allocation10 + $0x30] sm:$0xff]  ;;  %v831_v28 = vpack.c.bf16 %v376_v25, %v375_v23  ;;  %v378_v30 = vld [vmem:[#allocation13 + $0x38] sm:$0xff]  ;;  %v462_v38 = vld [vmem:[#allocation16] sm:$0xff]  ;;  %p1150_p1 = por %p1149_p0, %p1148_p13 }
  0xe3   :  { %811 = vmatpush3.bf16.msra.mxu0 %v810_v9  ;;  %v377_v29 = vld [vmem:[#allocation13 + $0x30] sm:$0xff]  ;;  %v822_v31 = vpack.c.bf16 %v289_v27, %v288_v26  ;;  %v686_v33 = vld [vmem:[#allocation8] ss:$0 sm:$0xff]  ;;  %v690_v45 = vld [vmem:[#allocation14] ss:$0 sm:$0xff] }
  0xe4   :  { %824 = vmatprep.subr.bf16.mxu0 %v1241_v0  ;;  %817 = vmatpush3.bf16.msra.mxu1 %v816_v18  ;;  %v834_v32 = vpack.c.bf16 %v378_v30, %v377_v29  ;;  %v463_v39 = vld [vmem:[#allocation16 + $0x8] sm:$0xff]  ;;  %v546_v41 = vld [vmem:[#allocation19] sm:$0xff]  ;;  %v547_v42 = vld [vmem:[#allocation19 + $0x8] sm:$0xff]  ;;  %p1151_p2 = pnand %p1150_p1, %p1144_p12 }
  0xe5   :  { %818 = vmatprep.subr.bf16.mxu1 %v1241_v0  ;;  %v837_v40 = vpack.c.bf16 %v463_v39, %v462_v38  ;;  %v840_v43 = vpack.c.bf16 %v547_v42, %v546_v41  ;;  %v456_v54 = vld [vmem:[#allocation5] sm:$0xff]  ;;  %v548_v58 = vld [vmem:[#allocation19 + $0x10] sm:$0xff]  ;;  %v549_v59 = vld [vmem:[#allocation19 + $0x18] sm:$0xff] }
  0xe6   :  { %740 = vmatmul.mubr.msk.f32.vlgmr.msra.gmra.mrb[0].mxu0 %vm207_vm1, %v195_v13  ;;  %v843_v60 = vpack.c.bf16 %v549_v59, %v548_v58  ;;  %v550_v61 = vld [vmem:[#allocation19 + $0x20] sm:$0xff]  ;;  %v551_v62 = vld [vmem:[#allocation19 + $0x28] sm:$0xff]  ;;  %v553_v2 = vld [vmem:[#allocation19 + $0x38] sm:$0xff] }
  0xe7   :  { %826 = vmatpush3.bf16.msra.mxu0 %v825_v14  ;;  %777 = vmatprep.mubr.msk.f32.mxu0 %vm1242_vm0, %v1243_v1  ;;  %v846_v63 = vpack.c.bf16 %v551_v62, %v550_v61  ;;  %v692_v4 = vld [vmem:[#allocation17] ss:$0 sm:$0xff] }
  0xe8   :  { %827 = vmatprep.subr.bf16.mxu0 %v1241_v0  ;;  %820 = vmatpush3.bf16.msra.mxu1 %v819_v24 }
  0xe9   :  { %821 = vmatprep.subr.bf16.mxu1 %v1241_v0 }
  0xeb   :  { %829 = vmatpush3.bf16.msra.mxu0 %v828_v20 }
  0xec   :  { %830 = vmatprep.subr.bf16.mxu0 %v1241_v0  ;;  %823 = vmatpush3.bf16.msra.mxu1 %v822_v31 }
  0xed   :  { %839 = vmatprep.subr.bf16.mxu1 %v1241_v0 }
  0xef   :  { %832 = vmatpush3.bf16.msra.mxu0 %v831_v28 }
  0xf0   :  { %833 = vmatprep.subr.bf16.mxu0 %v1241_v0 }
  0xf3   :  { %835 = vmatpush3.bf16.msra.mxu0 %v834_v32 }
  0xf4   :  { %836 = vmatprep.subr.bf16.mxu0 %v1241_v0 }
 0x1b9   :  { %v277_v34 = vpop.f32.mrb[0].mxu0 }
 0x1ba   :  { %v278_v35 = vadd.f32 %v686_v33, %v277_v34  ;;  %v741_v36 = vpop.f32.mrb[1].mxu0 }
 0x1bc   :  { %871 = vtanh.f32 %v278_v35 }
 0x1c6   :  { %v872_v37 = vpop.eup %871 }
 0x1c7   :  { %759 = vmatmul.mubr.msk.f32.vlgmr.msra.gmra.mrb[0].mxu1 %vm297_vm2, %v872_v37  ;;  %778 = vmatmul.mubr.msk.f32.vlgmr.msra.gmra.mrb[2].mxu0 %vm297_vm2, %v872_v37 }
 0x1c8   :  { %784 = vmatprep.mubr.msk.f32.mxu0 %vm1242_vm0, %v1243_v1  ;;  %803 = vmatprep.mubr.msk.f32.mxu1 %vm1242_vm0, %v1243_v1  ;;  %v552_v1 = vld [vmem:[#allocation19 + $0x30] sm:$0xff] }
 0x1c9   :  { %838 = vmatpush3.bf16.msra.mxu0 %v837_v40  ;;  %841 = vmatpush3.bf16.msra.mxu1 %v840_v43  ;;  %v849_v3 = vpack.c.bf16 %v553_v2, %v552_v1 }
 0x1ca   :  { %842 = vmatprep.subr.bf16.mxu1 %v1241_v0 }
 0x1cd   :  { %844 = vmatpush3.bf16.msra.mxu1 %v843_v60 }
 0x1ce   :  { %845 = vmatprep.subr.bf16.mxu1 %v1241_v0 }
 0x1d1   :  { %847 = vmatpush3.bf16.msra.mxu1 %v846_v63 }
 0x1d2   :  { %848 = vmatprep.subr.bf16.mxu1 %v1241_v0 }
 0x1d5   :  { %850 = vmatpush3.bf16.msra.mxu1 %v849_v3 }
 0x29a   :  { %v367_v46 = vpop.f32.mrb[0].mxu1  ;;  %v452_v47 = vpop.f32.mrb[2].mxu0 }
 0x29b   :  { %v368_v48 = vadd.f32 %v688_v44, %v367_v46  ;;  %v453_v49 = vadd.f32 %v690_v45, %v452_v47  ;;  %v760_v50 = vpop.f32.mrb[1].mxu1  ;;  %v779_v51 = vpop.f32.mrb[3].mxu0 }
 0x29d   :  { %v457_v52 = vmul.f32 0.5, %v453_v49  ;;  %636 = vst.msk [vmem:[#allocation23] sm:$0xff] %vm471_vm3, %v368_v48  ;;  %637 = vst.msk [vmem:[#allocation25] sm:$0xff] %vm471_vm3, %v453_v49 }
 0x29f   :  { %v458_v53 = vmul.f32 1.442695, %v457_v52 }
 0x2a1   :  { %873 = vpow2.f32 %v458_v53 }
 0x2ab   :  { %v874_v55 = vpop.eup %873 }
 0x2ac   :  { %v460_v56 = vmul.f32 %v874_v55, %v456_v54 }
 0x2ae   :  { %v461_v57 = vadd.f32 %v460_v56, %v368_v48 }
 0x2b0   :  { %785 = vmatmul.mubr.msk.f32.vlgmr.msra.gmra.mrb[4].mxu0 %vm471_vm3, %v461_v57 }
 0x383   :  { %v541_v5 = vpop.f32.mrb[4].mxu0 }
 0x384   :  { %v542_v6 = vadd.f32 %v692_v4, %v541_v5  ;;  %v786_v7 = vpop.f32.mrb[5].mxu0 }
 0x386   :  { %875 = vtanh.f32 %v542_v6 }
 0x390   :  { %v876_v8 = vpop.eup %875 }
 0x391   :  { %804 = vmatmul.mubr.msk.f32.vlgmr.msra.gmra.mrb[2].mxu1 %vm297_vm2, %v876_v8 }
 0x392   :  { %1154 = shalt.err (!%p1151_p2)
}
 0x393   :  { %s1155_s7 = scalar_lea.hbm %s1560_s13, 128 }
 0x394   :  { %p1156_p3 = scmp.ne.s32.totalorder %s1560_s13, %s1155_s7  ;;  %p1159_p4 = scmp.lt.u32.totalorder %s1155_s7, %s1560_s13 }
 0x396   :  { %p1161_p5 = pnand %p1159_p4, %p1156_p3 }
 0x398   :  { %1164 = shalt.err (!%p1161_p5)
}
 0x399   :  { %657 = dma.vmem_to_hbm [thread:$0]  %s655_s9, 128, %s1560_s13, [#allocation24]  }
 0x39a   :  { %s1245_s4 = smov [#allocation25]  }
 0x39b   :  { %s664_s8 = sshll.u32 %s1245_s4, 4  ;;  %s665_s8 = int_to_ptr.vmem [resolvable:$true] %s664_s8 }
 0x39c   :  { %s1165_s5 = scalar_lea.vmem %s665_s8, 128  ;;  %p1170_p7 = scmp.lt.s32.totalorder %s665_s8, %s665_s8 }
 0x39d   :  { %p1166_p6 = scmp.ne.s32.totalorder %s665_s8, %s1165_s5  ;;  %p1171_p8 = scmp.lt.s32.totalorder %s1165_s5, %s1165_s5 }
 0x39f   :  { %p1172_p9 = por %p1171_p8, %p1170_p7 }
 0x3a1   :  { %p1173_p10 = pnand %p1172_p9, %p1166_p6 }
 0x3a3   :  { %1176 = shalt.err (!%p1173_p10)
}
 0x3a4   :  { %s1177_s16 = scalar_lea.hbm %s1561_s14, 128 }
 0x3a5   :  { %p1178_p11 = scmp.ne.s32.totalorder %s1561_s14, %s1177_s16  ;;  %p1181_p12 = scmp.lt.u32.totalorder %s1177_s16, %s1561_s14 }
 0x3a7   :  { %p1183_p13 = pnand %p1181_p12, %p1178_p11 }
 0x3a9   :  { %1186 = shalt.err (!%p1183_p13)
}
 0x3aa   :  { %667 = dma.vmem_to_hbm [thread:$0]  %s665_s8, 128, %s1561_s14, [#allocation24]   ;;  %v694_v0 = vld [vmem:[#allocation20] ss:$0 sm:$0xff] }
 0x3ab   :  { %s1246_s20 = smov [#allocation22]  }
 0x3ac   :  { %s644_s30 = sshll.u32 %s1246_s20, 4  ;;  %s645_s30 = int_to_ptr.vmem [resolvable:$true] %s644_s30 }
 0x3ad   :  { %s1187_s10 = scalar_lea.vmem %s645_s30, 128  ;;  %p1192_p1 = scmp.lt.s32.totalorder %s645_s30, %s645_s30 }
 0x3ae   :  { %p1188_p0 = scmp.ne.s32.totalorder %s645_s30, %s1187_s10  ;;  %p1193_p2 = scmp.lt.s32.totalorder %s1187_s10, %s1187_s10 }
 0x3b0   :  { %p1194_p3 = por %p1193_p2, %p1192_p1 }
 0x3b2   :  { %p1195_p4 = pnand %p1194_p3, %p1188_p0 }
 0x464   :  { %v630_v9 = vpop.f32.mrb[2].mxu1 }
 0x465   :  { %v631_v10 = vadd.f32 %v694_v0, %v630_v9  ;;  %v805_v11 = vpop.f32.mrb[3].mxu1 }
 0x467   :  { %877 = vtanh.f32 %v631_v10 }
 0x471   :  { %v878_v12 = vpop.eup %877 }
 0x472   :  { %635 = vst.msk [vmem:[#allocation22] sm:$0xff] %vm207_vm1, %v878_v12 }
 0x473   :  { %1198 = shalt.err (!%p1195_p4)
}
 0x474   :  { %s1199_s3 = scalar_lea.hbm %s1559_s12, 128 }
 0x475   :  { %p1200_p5 = scmp.ne.s32.totalorder %s1559_s12, %s1199_s3  ;;  %p1203_p6 = scmp.lt.u32.totalorder %s1199_s3, %s1559_s12 }
 0x477   :  { %p1205_p7 = pnand %p1203_p6, %p1200_p5 }
 0x479   :  { %1208 = shalt.err (!%p1205_p7)
}
 0x47a   :  { %647 = dma.vmem_to_hbm [thread:$0]  %s645_s30, 128, %s1559_s12, [#allocation4]  }
 0x47b   :  { %1223 = dma.done.wait [#allocation4], 128  }
 0x47c   :  { %1224 = vsyncadd [#allocation4], 4294967168 }
 0x47d   :  { %1225 = dma.done.wait [#allocation24], 256  }
 0x47e   :  { %1226 = vsyncadd [#allocation24], 4294967040 }
 0x47f   :  { %677 = vsyncpa [#allocation3], 1 }
 0x480   :  { %678 = vsyncpa [#allocation6], 1 }
 0x481   :  { %679 = vsyncpa [#allocation9], 1 }
 0x482   :  { %680 = vsyncpa [#allocation12], 1 }
 0x483   :  { %681 = vsyncpa [#allocation15], 1 }
 0x484   :  { %682 = vsyncpa [#allocation18], 1 }
 0x485   :  { %683 = vsyncpa [#allocation21], 1 }
 0x486   :  { %684 = vsyncpa [#allocation4], 1 }
 0x487   :  { %685 = vsyncpa [#allocation24], 1 }

</bundles_post_ra>
